<compile_context>
chip_gen: v6e
topology: v6e:2x2x1
jax: 0.10.0
libtpu: 0.0.40
codegen_flags: <defaults>
</compile_context>

<pallas_src>
import math
from functools import partial

import jax
import jax.numpy as jnp
from jax import lax
from jax.experimental import pallas as pl
from jax.experimental.pallas import tpu as pltpu

LN_EPS = 1e-5


def _layernorm(x, gamma, beta, eps=LN_EPS):
    mu = jnp.mean(x, axis=-1, keepdims=True)
    xc = x - mu
    var = jnp.mean(xc * xc, axis=-1, keepdims=True)
    return xc * lax.rsqrt(var + eps) * gamma + beta


def _vmem_limit_bytes():
    # v5e/v6e: 128 MiB VMEM per core -> allow large tiles.  v7x (and unknown): 64 MiB
    # physical -> request 48 MiB and leave headroom for compiler-internal scratch.
    kind = jax.devices()[0].device_kind.lower()
    if "v5" in kind or "v6" in kind:
        return 96 * 1024 * 1024
    return 48 * 1024 * 1024


# --------------------- stage 1: LN1 + fused QKV projection ---------------------
def _ln1_qkv_kernel(x_ref, g_ref, b_ref, wqkv_ref, bqkv_ref, q_ref, k_ref, v_ref):
    x = x_ref[0]                                      # (tt, C) f32
    tt, C = x.shape
    h = _layernorm(x, g_ref[...], b_ref[...])
    # Single fused MXU pass over the (C, 3C) bf16 weight, f32 accumulation.
    # The 1/sqrt(D) softmax scale is already folded into the Q columns of wqkv/bqkv.
    qkv = jnp.dot(h.astype(jnp.bfloat16), wqkv_ref[...],
                  preferred_element_type=jnp.float32) + bqkv_ref[...]  # (tt, 3C) f32
    # Lane-dense (tt, C) stores — no head transpose, no masked vst.
    q_ref[0] = qkv[:, 0 * C:1 * C].astype(q_ref.dtype)
    k_ref[0] = qkv[:, 1 * C:2 * C].astype(k_ref.dtype)
    v_ref[0] = qkv[:, 2 * C:3 * C].astype(v_ref.dtype)


# ----- stage 2: flash-style causal attention + output projection + residual -----
def _flash_attn_proj_kernel(n_head,
                            qi_tab_ref, ki_tab_ref,            # scalar-prefetch (SMEM)
                            x_ref, q_ref, k_ref, v_ref, wp_ref, bp_ref,
                            o_ref, m_sc, l_sc, acc_sc):
    s_idx = pl.program_id(1)
    qi = qi_tab_ref[s_idx]
    ki = ki_tab_ref[s_idx]
    H = n_head

    @pl.when(ki == 0)
    def _init():
        m_sc[...] = jnp.full(m_sc.shape, -jnp.inf, dtype=m_sc.dtype)
        l_sc[...] = jnp.zeros(l_sc.shape, dtype=l_sc.dtype)
        acc_sc[...] = jnp.zeros(acc_sc.shape, dtype=acc_sc.dtype)

    q2 = q_ref[0]                                     # (tq, C) bf16 (already 1/sqrt(D)-scaled)
    k2 = k_ref[0]                                     # (tk, C) bf16
    v2 = v_ref[0]                                     # (tk, C) bf16
    tq, C = q2.shape
    tk = k2.shape[0]
    D = C // H

    # Split heads in-kernel (inputs stay lane-dense in HBM/VMEM).
    qh = q2.reshape(tq, H, D).transpose(1, 0, 2)      # (H, tq, D)
    kh = k2.reshape(tk, H, D).transpose(1, 0, 2)      # (H, tk, D)
    vh = v2.reshape(tk, H, D).transpose(1, 0, 2)      # (H, tk, D)

    scores = jnp.einsum('hqd,hkd->hqk', qh, kh,
                        preferred_element_type=jnp.float32)           # (H, tq, tk) f32

    def online_softmax_update(s):                     # s: (H, tq, tk) f32
        m_prev = m_sc[...]                            # (H, tq, 1)
        m_new = jnp.maximum(m_prev, jnp.max(s, axis=-1, keepdims=True))
        alpha = jnp.exp(m_prev - m_new)
        p = jnp.exp(s - m_new)                        # (H, tq, tk) f32
        l_sc[...] = alpha * l_sc[...] + jnp.sum(p, axis=-1, keepdims=True)
        acc_sc[...] = alpha * acc_sc[...] + jnp.einsum(
            'hqk,hkd->hqd', p.astype(jnp.bfloat16), vh,
            preferred_element_type=jnp.float32)
        m_sc[...] = m_new

    # Off-diagonal kv tile (ki < qi): fully unmasked -> no iota/compare/select work.
    @pl.when(ki < qi)
    def _off_diag():
        online_softmax_update(scores)

    # Diagonal tile (ki == qi): apply causal mask, then finalize + out-proj + residual.
    @pl.when(ki == qi)
    def _diag_and_finalize():
        row = lax.broadcasted_iota(jnp.int32, (tq, tk), 0)
        col = lax.broadcasted_iota(jnp.int32, (tq, tk), 1)
        online_softmax_update(jnp.where((col <= row)[None, :, :], scores, -1e30))

        y = acc_sc[...] / l_sc[...]                   # exact divide (once per q tile)
        y = y.transpose(1, 0, 2).reshape(tq, C)       # (tq, C)
        attn = jnp.dot(y.astype(jnp.bfloat16), wp_ref[...],
                       preferred_element_type=jnp.float32) + bp_ref[...]
        o_ref[0] = (x_ref[0] + attn).astype(o_ref.dtype)


# --------------------- stage 3: LN2 + MLP + residual ---------------------
def _ln2_mlp_kernel(x_ref, g_ref, b_ref, w1_ref, b1_ref, w2_ref, b2_ref, o_ref):
    x = x_ref[0]                                      # (tt, C) f32 (post-attention residual)
    h = _layernorm(x, g_ref[...], b_ref[...])
    hid = jnp.dot(h.astype(jnp.bfloat16), w1_ref[...],
                  preferred_element_type=jnp.float32) + b1_ref[...]   # (tt, 4C) f32
    hid = jax.nn.gelu(hid, approximate=True)
    mlp = jnp.dot(hid.astype(jnp.bfloat16), w2_ref[...],
                  preferred_element_type=jnp.float32) + b2_ref[...]   # (tt, C) f32
    o_ref[0] = (x + mlp).astype(o_ref.dtype)


# ------------------------------- wrapper -------------------------------
def gpt_block_forward(x, params, n_head, *, q_block=None, seq_block=None):
    """Forward pass of the GPT Block. x: (B, T, C) float32."""
    B, T, C = x.shape
    assert C % n_head == 0
    H = n_head
    D = C // H

    if seq_block is None:
        seq_block = min(T, 256)
    if q_block is None:
        q_block = min(T, 256)
    assert T % seq_block == 0 and T % q_block == 0
    assert q_block == T or q_block % 16 == 0       # bf16 sublane alignment for q/k/v tiles
    assert seq_block == T or seq_block % 16 == 0

    bf16 = jnp.bfloat16
    scale = 1.0 / math.sqrt(D)
    # Fused (C, 3C) QKV weight with the softmax scale folded into the Q columns; all matmul
    # weights pre-cast to bf16 (halves weight DMA).
    wqkv = jnp.concatenate([params["wq"] * scale, params["wk"], params["wv"]],
                           axis=1).astype(bf16)
    bqkv = jnp.concatenate([params["bq"] * scale, params["bk"], params["bv"]], axis=1)
    wp = params["wp"].astype(bf16)
    w1 = params["w1"].astype(bf16)
    w2 = params["w2"].astype(bf16)

    vmem_limit = _vmem_limit_bytes()
    cparams2d = pltpu.CompilerParams(
        dimension_semantics=("parallel", "parallel"), vmem_limit_bytes=vmem_limit)

    const2 = lambda shape: pl.BlockSpec(shape, lambda b, t: (0, 0))

    # ---- stage 1: LN1 + fused QKV (lane-dense (B, T, C) outputs) ----
    q, k, v = pl.pallas_call(
        _ln1_qkv_kernel,
        out_shape=(jax.ShapeDtypeStruct((B, T, C), bf16),) * 3,
        grid_spec=pltpu.PrefetchScalarGridSpec(
            num_scalar_prefetch=0,
            grid=(B, T // seq_block),
            in_specs=[
                pl.BlockSpec((1, seq_block, C), lambda b, t: (b, t, 0)),
                const2((1, C)), const2((1, C)),
                const2((C, 3 * C)), const2((1, 3 * C)),
            ],
            out_specs=[pl.BlockSpec((1, seq_block, C), lambda b, t: (b, t, 0))] * 3,
        ),
        compiler_params=cparams2d,
    )(x, params["ln1_g"], params["ln1_b"], wqkv, bqkv)

    # ---- stage 2: flash attention (triangular schedule) + out-proj + residual ----
    nq = T // q_block
    qi_list, ki_list = [], []
    for qi in range(nq):
        for ki in range(qi + 1):                       # only ki <= qi ever scheduled
            qi_list.append(qi)
            ki_list.append(ki)
    n_steps = len(qi_list)                             # nq*(nq+1)//2
    qi_tab = jnp.asarray(qi_list, dtype=jnp.int32)
    ki_tab = jnp.asarray(ki_list, dtype=jnp.int32)

    const3 = lambda shape: pl.BlockSpec(shape, lambda b, s, qt, kt: (0, 0))
    x1 = pl.pallas_call(
        partial(_flash_attn_proj_kernel, H),
        out_shape=jax.ShapeDtypeStruct((B, T, C), x.dtype),
        grid_spec=pltpu.PrefetchScalarGridSpec(
            num_scalar_prefetch=2,
            grid=(B, n_steps),
            in_specs=[
                pl.BlockSpec((1, q_block, C), lambda b, s, qt, kt: (b, qt[s], 0)),  # residual x
                pl.BlockSpec((1, q_block, C), lambda b, s, qt, kt: (b, qt[s], 0)),  # q
                pl.BlockSpec((1, q_block, C), lambda b, s, qt, kt: (b, kt[s], 0)),  # k
                pl.BlockSpec((1, q_block, C), lambda b, s, qt, kt: (b, kt[s], 0)),  # v
                const3((C, C)), const3((1, C)),
            ],
            out_specs=pl.BlockSpec((1, q_block, C), lambda b, s, qt, kt: (b, qt[s], 0)),
            scratch_shapes=[
                pltpu.VMEM((H, q_block, 1), jnp.float32),   # running max
                pltpu.VMEM((H, q_block, 1), jnp.float32),   # running sum
                pltpu.VMEM((H, q_block, D), jnp.float32),   # output accumulator
            ],
        ),
        compiler_params=pltpu.CompilerParams(
            dimension_semantics=("parallel", "arbitrary"),
            vmem_limit_bytes=vmem_limit),
    )(qi_tab, ki_tab, x, q, k, v, wp, params["bp"])

    # ---- stage 3: LN2 + MLP + residual ----
    out = pl.pallas_call(
        _ln2_mlp_kernel,
        out_shape=jax.ShapeDtypeStruct((B, T, C), x.dtype),
        grid_spec=pltpu.PrefetchScalarGridSpec(
            num_scalar_prefetch=0,
            grid=(B, T // seq_block),
            in_specs=[
                pl.BlockSpec((1, seq_block, C), lambda b, t: (b, t, 0)),
                const2((1, C)), const2((1, C)),
                const2((C, 4 * C)), const2((1, 4 * C)),
                const2((4 * C, C)), const2((1, C)),
            ],
            out_specs=pl.BlockSpec((1, seq_block, C), lambda b, t: (b, t, 0)),
        ),
        compiler_params=cparams2d,
    )(x1, params["ln2_g"], params["ln2_b"], w1, params["b1"], w2, params["b2"])

    return out


# ------------------------------- reference -------------------------------
def reference_block(x, params, n_head):
    """Pure-JAX f32 reference mirroring the PyTorch Block forward (eval mode)."""
    B, T, C = x.shape
    D = C // n_head

    def ln(z, g, b):
        mu = z.mean(-1, keepdims=True)
        var = ((z - mu) ** 2).mean(-1, keepdims=True)
        return (z - mu) / jnp.sqrt(var + LN_EPS) * g + b

    h = ln(x, params["ln1_g"], params["ln1_b"])
    q = (h @ params["wq"] + params["bq"]).reshape(B, T, n_head, D).transpose(0, 2, 1, 3)
    k = (h @ params["wk"] + params["bk"]).reshape(B, T, n_head, D).transpose(0, 2, 1, 3)
    v = (h @ params["wv"] + params["bv"]).reshape(B, T, n_head, D).transpose(0, 2, 1, 3)
    att = (q @ k.transpose(0, 1, 3, 2)) * (1.0 / math.sqrt(D))
    mask = jnp.tril(jnp.ones((T, T), dtype=bool))
    att = jnp.where(mask[None, None], att, -jnp.inf)
    att = jax.nn.softmax(att, axis=-1)
    y = (att @ v).transpose(0, 2, 1, 3).reshape(B, T, C)
    x1 = x + y @ params["wp"] + params["bp"]

    h2 = ln(x1, params["ln2_g"], params["ln2_b"])
    hid = jax.nn.gelu(h2 @ params["w1"] + params["b1"], approximate=True)
    return x1 + hid @ params["w2"] + params["b2"]


def init_params(key, n_embd):
    """Deterministic init matching nn.Linear/nn.LayerNorm shapes (weights stored transposed)."""
    C = n_embd
    ks = jax.random.split(key, 12)

    def lin(kw, kb, fan_in, fan_out):
        bound = 1.0 / math.sqrt(fan_in)
        w = jax.random.uniform(kw, (fan_in, fan_out), jnp.float32, -bound, bound)
        b = jax.random.uniform(kb, (1, fan_out), jnp.float32, -bound, bound)
        return w, b

    wq, bq = lin(ks[0], ks[1], C, C)
    wk, bk = lin(ks[2], ks[3], C, C)
    wv, bv = lin(ks[4], ks[5], C, C)
    wp, bp = lin(ks[6], ks[7], C, C)
    w1, b1 = lin(ks[8], ks[9], C, 4 * C)
    w2, b2 = lin(ks[10], ks[11], 4 * C, C)
    return dict(
        ln1_g=jnp.ones((1, C), jnp.float32), ln1_b=jnp.zeros((1, C), jnp.float32),
        ln2_g=jnp.ones((1, C), jnp.float32), ln2_b=jnp.zeros((1, C), jnp.float32),
        wq=wq, bq=bq, wk=wk, bk=bk, wv=wv, bv=bv, wp=wp, bp=bp,
        w1=w1, b1=b1, w2=w2, b2=b2)


if __name__ == "__main__":
    # Small config: n_embd=32, n_head=4, seq T=32, batch=2.
    B, T, C, H = 2, 32, 32, 4

    key = jax.random.PRNGKey(0)
    kx, kp = jax.random.split(key)
    x = jax.random.normal(kx, (B, T, C), dtype=jnp.float32)
    params = init_params(kp, C)

    # q_block/seq_block = 16 so the triangular schedule runs over multiple kv tiles
    # (init step, fully-unmasked off-diagonal tile, and masked diagonal/finalize tile).
    y = gpt_block_forward(x, params, H, q_block=16, seq_block=16)
    y = jax.block_until_ready(y)

    y_ref = reference_block(x, params, H)
    assert y.shape == (B, T, C)
    err = float(jnp.max(jnp.abs(y - y_ref)))
    assert jnp.allclose(y, y_ref, atol=5e-2, rtol=5e-2), err   # bf16 MXU vs f32 reference
    print("KERNEL_OK")
</pallas_src>

<mosaic_0001>
module attributes {stable_mosaic.version = 11 : i64} {
  func.func @_ln1_qkv_kernel(%arg0: i32, %arg1: i32, %arg2: memref<1x16x32xf32, #tpu.memory_space<vmem>>, %arg3: memref<1x32xf32, #tpu.memory_space<vmem>>, %arg4: memref<1x32xf32, #tpu.memory_space<vmem>>, %arg5: memref<32x96xbf16, #tpu.memory_space<vmem>>, %arg6: memref<1x96xf32, #tpu.memory_space<vmem>>, %arg7: memref<1x16x32xbf16, #tpu.memory_space<vmem>>, %arg8: memref<1x16x32xbf16, #tpu.memory_space<vmem>>, %arg9: memref<1x16x32xbf16, #tpu.memory_space<vmem>>) attributes {dimension_semantics = [#tpu.dimension_semantics<parallel>, #tpu.dimension_semantics<parallel>], iteration_bounds = array<i64: 2, 2>, scalar_prefetch = 0 : i64, scratch_operands = 0 : i64, tpu.core_type = #tpu.core_type<tc>, window_params = [{transform_indices = @transform_0, window_bounds = array<i64: 1, 16, 32>}, {pipeline_mode = #tpu.pipeline_mode<synchronous>, transform_indices = @transform_1, window_bounds = array<i64: 1, 32>}, {pipeline_mode = #tpu.pipeline_mode<synchronous>, transform_indices = @transform_2, window_bounds = array<i64: 1, 32>}, {pipeline_mode = #tpu.pipeline_mode<synchronous>, transform_indices = @transform_3, window_bounds = array<i64: 32, 96>}, {pipeline_mode = #tpu.pipeline_mode<synchronous>, transform_indices = @transform_4, window_bounds = array<i64: 1, 96>}, {transform_indices = @transform_5, window_bounds = array<i64: 1, 16, 32>}, {transform_indices = @transform_6, window_bounds = array<i64: 1, 16, 32>}, {transform_indices = @transform_7, window_bounds = array<i64: 1, 16, 32>}]} {
    %c0 = arith.constant 0 : index
    %c0_0 = arith.constant 0 : index
    %c0_1 = arith.constant 0 : index
    %0 = vector.load %arg2[%c0, %c0_0, %c0_1] : memref<1x16x32xf32, #tpu.memory_space<vmem>>, vector<1x16x32xf32>
    %1 = vector.shape_cast %0 : vector<1x16x32xf32> to vector<16x32xf32>
    %c0_2 = arith.constant 0 : index
    %c0_3 = arith.constant 0 : index
    %2 = vector.load %arg3[%c0_2, %c0_3] : memref<1x32xf32, #tpu.memory_space<vmem>>, vector<1x32xf32>
    %c0_4 = arith.constant 0 : index
    %c0_5 = arith.constant 0 : index
    %3 = vector.load %arg4[%c0_4, %c0_5] : memref<1x32xf32, #tpu.memory_space<vmem>>, vector<1x32xf32>
    %cst = arith.constant dense<0.000000e+00> : vector<16xf32>
    %4 = vector.multi_reduction <add>, %1, %cst [1] : vector<16x32xf32> to vector<16xf32>
    %5 = vector.shape_cast %4 : vector<16xf32> to vector<16x1xf32>
    %cst_6 = arith.constant 3.200000e+01 : f32
    %6 = vector.broadcast %cst_6 : f32 to vector<16x1xf32>
    %7 = arith.divf %5, %6 : vector<16x1xf32>
    %8 = vector.broadcast %7 : vector<16x1xf32> to vector<16x32xf32>
    %9 = arith.subf %1, %8 : vector<16x32xf32>
    %10 = arith.mulf %9, %9 : vector<16x32xf32>
    %cst_7 = arith.constant dense<0.000000e+00> : vector<16xf32>
    %11 = vector.multi_reduction <add>, %10, %cst_7 [1] : vector<16x32xf32> to vector<16xf32>
    %12 = vector.shape_cast %11 : vector<16xf32> to vector<16x1xf32>
    %cst_8 = arith.constant 3.200000e+01 : f32
    %13 = vector.broadcast %cst_8 : f32 to vector<16x1xf32>
    %14 = arith.divf %12, %13 : vector<16x1xf32>
    %cst_9 = arith.constant 9.99999974E-6 : f32
    %15 = vector.broadcast %cst_9 : f32 to vector<16x1xf32>
    %16 = arith.addf %14, %15 : vector<16x1xf32>
    %17 = math.rsqrt %16 : vector<16x1xf32>
    %18 = vector.broadcast %17 : vector<16x1xf32> to vector<16x32xf32>
    %19 = arith.mulf %9, %18 : vector<16x32xf32>
    %20 = vector.broadcast %2 : vector<1x32xf32> to vector<16x32xf32>
    %21 = arith.mulf %19, %20 : vector<16x32xf32>
    %22 = vector.broadcast %3 : vector<1x32xf32> to vector<16x32xf32>
    %23 = arith.addf %21, %22 : vector<16x32xf32>
    %24 = arith.truncf %23 : vector<16x32xf32> to vector<16x32xbf16>
    %c0_10 = arith.constant 0 : index
    %c0_11 = arith.constant 0 : index
    %25 = vector.load %arg5[%c0_10, %c0_11] : memref<32x96xbf16, #tpu.memory_space<vmem>>, vector<32x96xbf16>
    %cst_12 = arith.constant dense<0.000000e+00> : vector<16x96xf32>
    %26 = tpu.matmul %24, %25, %cst_12 {dimension_numbers = #tpu.dot_dimension_numbers<[1], [0], [0], [1], [0, 0, 1, 1], [], []>} : vector<16x32xbf16>, vector<32x96xbf16>, vector<16x96xf32> -> vector<16x96xf32>
    %c0_13 = arith.constant 0 : index
    %c0_14 = arith.constant 0 : index
    %27 = vector.load %arg6[%c0_13, %c0_14] : memref<1x96xf32, #tpu.memory_space<vmem>>, vector<1x96xf32>
    %28 = vector.broadcast %27 : vector<1x96xf32> to vector<16x96xf32>
    %29 = arith.addf %26, %28 : vector<16x96xf32>
    %30 = vector.extract_strided_slice %29 {offsets = [0, 0], sizes = [16, 32], strides = [1, 1]} : vector<16x96xf32> to vector<16x32xf32>
    %31 = arith.truncf %30 : vector<16x32xf32> to vector<16x32xbf16>
    %c0_15 = arith.constant 0 : index
    %c0_16 = arith.constant 0 : index
    %c0_17 = arith.constant 0 : index
    %32 = vector.load %arg7[%c0_15, %c0_16, %c0_17] : memref<1x16x32xbf16, #tpu.memory_space<vmem>>, vector<1x16x32xbf16>
    %33 = vector.shape_cast %32 : vector<1x16x32xbf16> to vector<16x32xbf16>
    %34 = vector.shape_cast %31 : vector<16x32xbf16> to vector<1x16x32xbf16>
    tpu.vector_store %arg7[%c0_15, %c0_16, %c0_17], %34 {strides = array<i32>} : memref<1x16x32xbf16, #tpu.memory_space<vmem>>, vector<1x16x32xbf16>,
    %35 = vector.extract_strided_slice %29 {offsets = [0, 32], sizes = [16, 32], strides = [1, 1]} : vector<16x96xf32> to vector<16x32xf32>
    %36 = arith.truncf %35 : vector<16x32xf32> to vector<16x32xbf16>
    %c0_18 = arith.constant 0 : index
    %c0_19 = arith.constant 0 : index
    %c0_20 = arith.constant 0 : index
    %37 = vector.load %arg8[%c0_18, %c0_19, %c0_20] : memref<1x16x32xbf16, #tpu.memory_space<vmem>>, vector<1x16x32xbf16>
    %38 = vector.shape_cast %37 : vector<1x16x32xbf16> to vector<16x32xbf16>
    %39 = vector.shape_cast %36 : vector<16x32xbf16> to vector<1x16x32xbf16>
    tpu.vector_store %arg8[%c0_18, %c0_19, %c0_20], %39 {strides = array<i32>} : memref<1x16x32xbf16, #tpu.memory_space<vmem>>, vector<1x16x32xbf16>,
    %40 = vector.extract_strided_slice %29 {offsets = [0, 64], sizes = [16, 32], strides = [1, 1]} : vector<16x96xf32> to vector<16x32xf32>
    %41 = arith.truncf %40 : vector<16x32xf32> to vector<16x32xbf16>
    %c0_21 = arith.constant 0 : index
    %c0_22 = arith.constant 0 : index
    %c0_23 = arith.constant 0 : index
    %42 = vector.load %arg9[%c0_21, %c0_22, %c0_23] : memref<1x16x32xbf16, #tpu.memory_space<vmem>>, vector<1x16x32xbf16>
    %43 = vector.shape_cast %42 : vector<1x16x32xbf16> to vector<16x32xbf16>
    %44 = vector.shape_cast %41 : vector<16x32xbf16> to vector<1x16x32xbf16>
    tpu.vector_store %arg9[%c0_21, %c0_22, %c0_23], %44 {strides = array<i32>} : memref<1x16x32xbf16, #tpu.memory_space<vmem>>, vector<1x16x32xbf16>,
    return
  }
  func.func @transform_0(%arg0: i32, %arg1: i32) -> (i32, i32, i32) {
    %c0_i32 = arith.constant 0 : i32
    %c0_i32_0 = arith.constant 0 : i32
    return %arg0, %arg1, %c0_i32 : i32, i32, i32
  }
  func.func @transform_1(%arg0: i32, %arg1: i32) -> (i32, i32) {
    %c0_i32 = arith.constant 0 : i32
    %c0_i32_0 = arith.constant 0 : i32
    %c0_i32_1 = arith.constant 0 : i32
    return %c0_i32, %c0_i32_0 : i32, i32
  }
  func.func @transform_2(%arg0: i32, %arg1: i32) -> (i32, i32) {
    %c0_i32 = arith.constant 0 : i32
    %c0_i32_0 = arith.constant 0 : i32
    %c0_i32_1 = arith.constant 0 : i32
    return %c0_i32, %c0_i32_0 : i32, i32
  }
  func.func @transform_3(%arg0: i32, %arg1: i32) -> (i32, i32) {
    %c0_i32 = arith.constant 0 : i32
    %c0_i32_0 = arith.constant 0 : i32
    %c0_i32_1 = arith.constant 0 : i32
    return %c0_i32, %c0_i32_0 : i32, i32
  }
  func.func @transform_4(%arg0: i32, %arg1: i32) -> (i32, i32) {
    %c0_i32 = arith.constant 0 : i32
    %c0_i32_0 = arith.constant 0 : i32
    %c0_i32_1 = arith.constant 0 : i32
    return %c0_i32, %c0_i32_0 : i32, i32
  }
  func.func @transform_5(%arg0: i32, %arg1: i32) -> (i32, i32, i32) {
    %c0_i32 = arith.constant 0 : i32
    %c0_i32_0 = arith.constant 0 : i32
    return %arg0, %arg1, %c0_i32 : i32, i32, i32
  }
  func.func @transform_6(%arg0: i32, %arg1: i32) -> (i32, i32, i32) {
    %c0_i32 = arith.constant 0 : i32
    %c0_i32_0 = arith.constant 0 : i32
    return %arg0, %arg1, %c0_i32 : i32, i32, i32
  }
  func.func @transform_7(%arg0: i32, %arg1: i32) -> (i32, i32, i32) {
    %c0_i32 = arith.constant 0 : i32
    %c0_i32_0 = arith.constant 0 : i32
    return %arg0, %arg1, %c0_i32 : i32, i32, i32
  }
}

</mosaic_0001>

<bundles_post_ra>
// kernel: tpu_custom_call.1
= control target key start
LH: loop header
LB: loop body
LE: loop exit
PB: predicated region body
PF: predicated region fallthrough
CT: control target
= control target key end

     0   :  { %s1464_s0 = inlined_call_operand.hbm [shape: f32[2,32,32], index: 0, kind: input, shape index: {}]   ;;  %s1465_s1 = inlined_call_operand.vmem [shape: f32[1,32], index: 1, kind: input, shape index: {}]   ;;  %s1466_s2 = inlined_call_operand.vmem [shape: f32[1,32], index: 2, kind: input, shape index: {}]   ;;  %s1467_s3 = inlined_call_operand.hbm [shape: bf16[32,96], index: 3, kind: input, shape index: {}]   ;;  %s1468_s4 = inlined_call_operand.vmem [shape: f32[1,96], index: 4, kind: input, shape index: {}]   ;;  %s1469_s5 = inlined_call_operand.hbm [shape: bf16[2,32,32], index: 5, kind: output, shape index: {0}]   ;;  %s1470_s6 = inlined_call_operand.hbm [shape: bf16[2,32,32], index: 6, kind: output, shape index: {1}]   ;;  %s1471_s7 = inlined_call_operand.hbm [shape: bf16[2,32,32], index: 7, kind: output, shape index: {2}]  }
   0x1   :  { %1482 = sst [smem:[#allocation20_spill]] %s1467_s3 }
   0x2   :  { %1483 = sst [smem:[#allocation21_spill]] %s1469_s5 }
   0x3   :  { %1484 = sst [smem:[#allocation22_spill]] %s1470_s6 }
   0x4   :  { %1485 = sst [smem:[#allocation23_spill]] %s1471_s7 }
   0x5   :  { %13 = vsyncpa [#allocation3], 0 }
   0x6   :  { %15 = vsyncpa [#allocation3 + $0x1], 0 }
   0x7   :  { %16 = vsyncpa [#allocation6], 0 }
   0x8   :  { %17 = vsyncpa [#allocation4], 0 }
   0x9   :  { %19 = vsyncpa [#allocation4 + $0x1], 0 }
   0xa   :  { %20 = vsyncpa [#allocation9], 0 }
   0xb   :  { %22 = vsyncpa [#allocation9 + $0x1], 0  ;;  %s1159_s24 = smov 0   ;;  %s1161_s25 = smov 0  }
   0xc   :  { %s1163_s26 = smov 0   ;;  %s1165_s27 = smov 0  }
   0xd   :  { %s1167_s28 = smov 0   ;;  %s1169_s29 = smov 0  }
   0xe   :  { %s1171_s30 = smov 0   ;;  %s1173_s8 = smov 0  }
   0xf LB: > { %1486 = sst [smem:[#allocation15_spill]] %s1075_s24  ;;  %s1200_s9 = sadd.s32 4294967295, %s1103_s8   ;;  %s1103_s8 = sphi %s1173_s8, %s28_s8   ;;  %s1099_s30 = sphi %s1171_s30, %s1514_s30   ;;  %s1095_s29 = sphi %s1169_s29, %s1509_s29   ;;  %s1091_s28 = sphi %s1167_s28, %s1513_s28   ;;  %s1087_s27 = sphi %s1165_s27, %s1508_s27   ;;  %s1083_s26 = sphi %s1163_s26, %s1512_s26   ;;  %s1079_s25 = sphi %s1161_s25, %s1511_s25   ;;  %s1075_s24 = sphi %s1159_s24, %s1510_s24  }
  0x10   : > { %1487 = sst [smem:[#allocation16_spill]] %s1095_s29  ;;  %s1472_s10 = sadd.s32 4294967294, %s1103_s8  }
  0x11   : > { %p62_p0 = scmp.ne.s32.totalorder %s1079_s25, %s1075_s24  ;;  %p63_p1 = scmp.eq.s32.totalorder %s1200_s9, 0 }
  0x12   : > { %p178_p3 = scmp.eq.s32.totalorder %s1472_s10, 3  ;;  %p731_p5 = scmp.ge.s32.totalorder %s1103_s8, 1 }
  0x13   : > { %p1211_p4 = por %p63_p1, %p62_p0  ;;  %p241_p7 = scmp.lt.s32.totalorder %s1103_s8, 5 }
  0x14   : > { %p1216_p6 = por %p178_p3, %p62_p0  ;;  %s1105_s14 = smov [#allocation5]  }
  0x15   : > { %p1221_p8 = pnand %p731_p5, %p241_p7  ;;  %s259_s15 = sshll.u32 %s1105_s14, 4  ;;  %s260_s15 = int_to_ptr.vmem [resolvable:$true] %s259_s15 }
  0x16   : > { %s1489_s12 = scalar_select %p1216_p6, 1, 0 }
  0x17   : > { %p791_p9 = pneg %p1221_p8  ;;  %s904_s16 = scalar_lea.vmem %s260_s15, 256 }
  0x18   : > { %1490 = sst [smem:[#allocation17_spill]] %s1489_s12  ;;  %p905_p12 = scmp.ne.s32.totalorder %s260_s15, %s904_s16 }
  0x19   : > { %p792_p10 = pnand %p791_p9, %p63_p1  ;;  %p912_p3 = scmp.lt.s32.totalorder %s260_s15, %s260_s15 }
  0x1a   : > { %p913_p2 = scmp.lt.s32.totalorder %s904_s16, %s904_s16 }
  0x1b   : > { %p895_p11 = pneg %p792_p10 }
  0x1c   : > { %p914_p6 = por %p913_p2, %p912_p3 }
  0x1d   : > { %p907_p13 = pnand %p905_p12, %p895_p11 }
  0x1f   : > { %p908_p0 = pneg %p907_p13 }
  0x21   : > { %p915_p5 = pnand %p914_p6, %p908_p0 }
  0x23   : > { %918 = shalt.err (!%p915_p5)
}
  0x24   : > { %s1106_s17 = smov 64   ;;  %s1107_s18 = smov 4  }
  0x25   : > { %s1492_s3 = sld [smem:[#allocation20_spill]]  ;;  %s37_s21 = sadd.s32 1, %s1095_s29 }
  0x26   : > { %p38_p2 = scmp.ge.s32.totalorder %s37_s21, 2  ;;  %s40_s22 = sadd.s32 1, %s1099_s30 }
  0x27   : > { %s49_s23 = sadd.s32 1, %s1083_s26  ;;  %p56_p6 = scmp.ne.s32.totalorder %s1083_s26, %s1079_s25 }
  0x28   : > { %s1516_s21 = smov (%p38_p2, %s37_s21), 0  ;;  %s1518_s22 = smov (!%p38_p2, %s40_s22), %s1099_s30 }
  0x29   : > { %1493 = sst [smem:[#allocation18_spill]] %s1516_s21  ;;  %s45_s14 = ssub.s32 %s1095_s29, %s1516_s21 }
  0x2a   : > { %p57_p7 = scmp.eq.s32.totalorder %s1103_s8, 0  ;;  %p42_p9 = scmp.ge.s32.totalorder %s1518_s22, 2 }
  0x2b   : > { %794 = dma.hbm_to_vmem [thread:$0]  (!%p792_p10), %s1492_s3, 256, %s260_s15, [#allocation6], %s1106_s17, %s1106_s17, %s1107_s18  }
  0x2c   : > { %p1494_p11 = scmp.eq.s32.totalorder %s1200_s9, 3  ;;  %p1249_p10 = por %p57_p7, %p56_p6 }
  0x2d   : > { %p810_p13 = scmp.lt.s32.totalorder %s1103_s8, 4  ;;  %s1520_s22 = smov (%p42_p9, %s1518_s22), 0 }
  0x2e   : > { %p1245_p12 = por %p1494_p11, %p56_p6  ;;  %s276_s17 = sand.u32 1, %s1083_s26  }
  0x2f   : > { %s735_s18 = sshll.u32 %s1095_s29, 1  ;;  %s44_s19 = ssub.s32 %s1099_s30, %s1520_s22 }
  0x30   : > { %s1495_s16 = scalar_select %p1245_p12, 1, 0 }
  0x31   : > { %s46_s20 = sor.u32 %s45_s14, %s44_s19  ;;  %s734_s10 = sshll.u32 %s276_s17, 4 }
  0x32   : > { %1496 = sst [smem:[#allocation19_spill]] %s1495_s16  ;;  %p47_p0 = scmp.eq.s32.totalorder %s46_s20, 0 }
  0x33   : > { %s736_s3 = sshll.u32 %s1099_s30, 2  ;;  %s280_s21 = scalar_lea.vmem [#allocation2], %s734_s10 }
  0x34   : > { %s289_s12 = sshll.u32 %s280_s21, 4  ;;  %s286_s7 = sadd.s32 %s736_s3, %s735_s18  ;;  %s290_s12 = int_to_ptr.vmem [resolvable:$true] %s289_s12 }
  0x35   : > { %s1262_s24 = scalar_select %p47_p0, %s1083_s26, %s49_s23  }
  0x36   : > { %s737_s6 = sshll.u32 %s286_s7, 7  ;;  %p1268_p3 = pnand %p810_p13, %p1249_p10 }
  0x37   : > { %s288_s14 = scalar_lea.hbm %s1464_s0, %s737_s6  ;;  %s277_s19 = scalar_lea.sflag [#allocation3], %s276_s17 }
  0x38   : > { %p921_p5 = pneg %p1268_p3  ;;  %s932_s10 = scalar_lea.vmem %s290_s12, 256 }
  0x39   : > { %p933_p2 = scmp.ne.s32.totalorder %s290_s12, %s932_s10  ;;  %s1108_s3 = smov [#allocation2]  }
  0x3a   : > { %s937_s7 = sshll.u32 %s1108_s3, 4  ;;  %s938_s7 = int_to_ptr.vmem [resolvable:$false] %s937_s7 }
  0x3b   : > { %p935_p6 = pnand %p933_p2, %p921_p5  ;;  %s939_s21 = scalar_lea.vmem %s938_s7, 512 }
  0x3c   : > { %p940_p9 = scmp.lt.s32.totalorder %s290_s12, %s938_s7  ;;  %p941_p11 = scmp.lt.s32.totalorder %s939_s21, %s932_s10 }
  0x3d   : > { %p936_p7 = pneg %p935_p6 }
  0x3e   : > { %p942_p10 = por %p941_p11, %p940_p9 }
  0x40   : > { %p943_p13 = pnand %p942_p10, %p936_p7 }
  0x42   : > { %946 = shalt.err (!%p943_p13)
}
  0x43   : > { %s1109_s23 = smov 128   ;;  %s1110_s29 = smov 8  }
  0x44   : > { %798 = dma.hbm_to_vmem [thread:$0]  (!%p1268_p3), %s288_s14, 256, %s290_s12, %s277_s19, %s1109_s23, %s1109_s23, %s1110_s29  }
  0x45   : > { %301 = sbr.rel (%p1221_p8) target bundleno = 743 (0x2e7), region = 40  ;;  %s1282_s6 = sand.u32 (!%p1221_p8), 1, %s1079_s25  }
  0x46   : > { %s739_s16 = sshll.u32 (!%p1221_p8), %s1282_s6, 4  ;;  %s304_s15 = scalar_lea.sflag (!%p1221_p8), [#allocation3], %s1282_s6 }
  0x47   : > { %s307_s17 = scalar_lea.vmem (!%p1221_p8), [#allocation2], %s739_s16 }
  0x4a   : > { %1058 = dma.done.wait (%p1211_p4), %s304_s15, 256  }
  0x4b   : > { %1060 = vsyncadd (%p1211_p4), %s304_s15, 4294967040 }
  0x4c   : > { %1062 = dma.done.wait (%p63_p1), [#allocation6], 256  }
  0x4d   : > { %1064 = vsyncadd (%p63_p1), [#allocation6], 4294967040  ;;  %vm361_vm0 = vcmask 261120   ;;  %v357_v0 = vld [vmem:[%s307_s17] sm:$0xff]  ;;  %v358_v1 = vld [vmem:[%s307_s17 + $0x8] sm:$0xff]  ;;  %v1111_v15 = vmov 0.0  }
  0x4e   : > { %v362_v2 = vsel %vm361_vm0, %v357_v0, 0.0  ;;  %v365_v3 = vsel %vm361_vm0, %v358_v1, 0.0  ;;  %v887_v14 = vld [vmem:[#allocation5 + $0x8] sm:$0xff]   ;;  %771 = vmatprep.subr.bf16.mxu0 %v1111_v15  ;;  %vm1112_vm1 = vmmov 0   ;;  %v888_v16 = vld [vmem:[#allocation5] sm:$0xff]   ;;  %s1306_s18 = sshll.u32 %s1282_s6, 3 }
  0x4f   : > { %363 = vadd.xlane.f32.xlu0 %v362_v2  ;;  %775 = vmatprep.mubr.msk.bf16.mxu0 %vm1112_vm1, %v1111_v15  ;;  %v744_v25 = vld [vmem:[%s1465_s1] ss:$0 sm:$0xff]  ;;  %s755_s19 = sshll.u32 %s1087_s27, 1  ;;  %s756_s10 = sshll.u32 %s1091_s28, 2  ;;  %vm481_vm2 = vcmask 257024  }
  0x50   : > { %772 = vmatpush3.bf16.msra.mxu0 %v887_v14  ;;  %v745_v29 = vld [vmem:[%s1466_s2] ss:$0 sm:$0xff]  ;;  %s523_s3 = sadd.s32 %s756_s10, %s755_s19  ;;  %s337_s7 = scalar_lea.vmem [#allocation7], %s1306_s18 }
  0x51   : > { %773 = vmatprep.subr.bf16.mxu0 %v1111_v15  ;;  %v746_v34 = vld [vmem:[%s1468_s4] ss:$0 sm:$0xff]  ;;  %s526_s21 = sshll.u32 %s337_s7, 4  ;;  %s1314_s23 = sshll.u32 %s523_s3, 6  ;;  %s1324_s21 = int_to_ptr.vmem [resolvable:$true] %s526_s21 }
  0x52   : > { %s1113_s16 = smov 64   ;;  %s1114_s27 = smov 96  }
  0x53   : > { %366 = vadd.xlane.f32.xlu0 %v365_v3  ;;  %s1500_s17 = sld [smem:[#allocation21_spill]]  ;;  %s501_s11 = scalar_lea.sflag [#allocation4], %s1282_s6 }
  0x54   : > { %774 = vmatpush3.bf16.msra.mxu0 %v888_v16  ;;  %s947_s12 = scalar_lea.vmem %s1324_s21, 128  ;;  %s1115_s13 = smov [#allocation7]  }
  0x55   : > { %p948_p1 = scmp.ne.s32.totalorder %s1324_s21, %s947_s12  ;;  %s951_s20 = sshll.u32 %s1115_s13, 4  ;;  %s952_s20 = int_to_ptr.vmem [resolvable:$false] %s951_s20 }
  0x56   : > { %s953_s14 = scalar_lea.vmem %s952_s20, 256  ;;  %p954_p0 = scmp.lt.s32.totalorder %s1324_s21, %s952_s20 }
  0x57   : > { %p949_p4 = pnand %p948_p1, %p1245_p12  ;;  %p955_p3 = scmp.lt.s32.totalorder %s953_s14, %s947_s12 }
  0x59   : > { %s1322_s5 = scalar_lea.hbm %s1500_s17, %s1314_s23  ;;  %p950_p8 = pneg %p949_p4 }
  0x5a   : > { %p956_p5 = por %p955_p3, %p954_p0 }
  0x5c   : > { %p957_p2 = pnand %p956_p5, %p950_p8 }
  0xd8   : > { %v364_v4 = vpop.xlane.xlu0 %363 }
  0xd9   : > { %v369_v5 = vmul.f32 0.03125, %v364_v4 }
  0xdb   : > { %v371_v6 = vsub.f32 %v357_v0, %v369_v5 }
  0xdc   : > { %v367_v7 = vpop.xlane.xlu0 %366 }
  0xdd   : > { %v370_v8 = vmul.f32 0.03125, %v367_v7  ;;  %v373_v9 = vmul.f32 %v371_v6, %v371_v6 }
  0xdf   : > { %v372_v10 = vsub.f32 %v358_v1, %v370_v8  ;;  %v375_v11 = vsel %vm361_vm0, %v373_v9, 0.0 }
  0xe0   : > { %376 = vadd.xlane.f32.xlu1 %v375_v11 }
  0xe1   : > { %v374_v12 = vmul.f32 %v372_v10, %v372_v10 }
  0xe3   : > { %v378_v13 = vsel %vm361_vm0, %v374_v12, 0.0 }
  0xe4   : > { %379 = vadd.xlane.f32.xlu1 %v378_v13 }
 0x169   : > { %v377_v17 = vpop.xlane.xlu1 %376 }
 0x16a   : > { %v381_v18 = vmul.f32 0.03125, %v377_v17 }
 0x16c   : > { %v383_v19 = vadd.f32 1e-05, %v381_v18 }
 0x16d   : > { %v380_v20 = vpop.xlane.xlu1 %379 }
 0x16e   : > { %889 = vrsqrt.f32 %v383_v19  ;;  %v382_v21 = vmul.f32 0.03125, %v380_v20 }
 0x170   : > { %v384_v22 = vadd.f32 1e-05, %v382_v21 }
 0x172   : > { %891 = vrsqrt.f32 %v384_v22 }
 0x17b   : > { %v890_v23 = vpop.eup %889 }
 0x17c   : > { %v387_v24 = vmul.f32 %v890_v23, %v371_v6 }
 0x17e   : > { %v395_v28 = vmul.f32 %v744_v25, %v387_v24 }
 0x17f   : > { %v892_v26 = vpop.eup %891 }
 0x180   : > { %v388_v27 = vmul.f32 %v892_v26, %v372_v10  ;;  %v403_v31 = vadd.f32 %v745_v29, %v395_v28 }
 0x182   : > { %v396_v30 = vmul.f32 %v744_v25, %v388_v27 }
 0x184   : > { %v404_v32 = vadd.f32 %v745_v29, %v396_v30 }
 0x186   : > { %v405_v33 = vpack.c.bf16 %v404_v32, %v403_v31 }
 0x188   : > { %776 = vmatmul.mubr.msk.bf16.vlgmr.msra.gmra.mxu0 %vm361_vm0, %v405_v33 }
 0x248   : > { %v466_v35 = vpop.f32.mrf.mxu0 }
 0x249   : > { %v467_v36 = vadd.f32 %v746_v34, %v466_v35 }
 0x24a   : > { %v777_v37 = vpop.f32.mrf.mxu0 }
 0x24b   : > { %v766_v38 = vpack.c.bf16 %v467_v36, %v467_v36 }
 0x24c   : > { %v469_v39 = vpop.f32.mrf.mxu0 }
 0x24d   : > { %482 = vst.msk [vmem:[%s337_s7] sm:$0xf] %vm481_vm2, %v766_v38  ;;  %v470_v40 = vadd.f32 %v746_v34, %v469_v39  ;;  %492 = vrot.lane.b32.xlu1 %v766_v38, %s1113_s16  ;;  %484 = vrot.lane.b32.xlu0 %v766_v38, %s1114_s27 }
 0x24e   : > { %v778_v41 = vpop.f32.mrf.mxu0 }
 0x24f   : > { %v767_v42 = vpack.c.bf16 %v470_v40, %v470_v40 }
 0x251   : > { %483 = vst.msk [vmem:[%s337_s7 + $0x4] sm:$0xf] %vm481_vm2, %v767_v42  ;;  %486 = vrot.lane.b32.xlu1 %v767_v42, %s1114_s27 }
 0x252   : > { %960 = shalt.err (!%p957_p2)
}
 0x253   : > { %s961_s19 = scalar_lea.hbm %s1322_s5, 128  ;;  %s965_s7 = scalar_lea.hbm %s1500_s17, 512 }
 0x254   : > { %p962_p6 = scmp.ne.s32.totalorder %s1322_s5, %s961_s19  ;;  %p966_p11 = scmp.lt.s32.totalorder %s1322_s5, %s1500_s17 }
 0x255   : > { %p967_p10 = scmp.lt.s32.totalorder %s965_s7, %s961_s19 }
 0x256   : > { %p963_p7 = pnand %p962_p6, %p1245_p12 }
 0x257   : > { %p968_p13 = por %p967_p10, %p966_p11 }
 0x258   : > { %p964_p9 = pneg %p963_p7 }
 0x25a   : > { %p969_p1 = pnand %p968_p13, %p964_p9 }
 0x25c   : > { %972 = shalt.err (!%p969_p1)
}
 0x25d   : > { %s1116_s15 = smov 4   ;;  %494 = vrot.lane.b32.xlu1 %v767_v42, %s1113_s16  ;;  %s344_s12 = scalar_lea.vmem [#allocation8], %s1306_s18 }
 0x25e   : > { %785 = dma.vmem_to_hbm [thread:$0]  (%p1245_p12), %s1324_s21, 128, %s1322_s5, %s501_s11, %s1113_s16, %s1113_s16, %s1116_s15  }
 0x25f   : > { %s544_s13 = sshll.u32 %s344_s12, 4  ;;  %s505_s20 = sand.u32 1, %s1200_s9   ;;  %s1362_s13 = int_to_ptr.vmem [resolvable:$true] %s544_s13 }
 0x260   : > { %s1357_s14 = scalar_lea.vmem [#allocation10], %s1306_s18  ;;  %s1501_s5 = sld [smem:[#allocation22_spill]] }
 0x261   : > { %s562_s19 = sshll.u32 %s1357_s14, 4  ;;  %s1372_s9 = scalar_lea.sflag [#allocation9], %s505_s20  ;;  %s1400_s19 = int_to_ptr.vmem [resolvable:$true] %s562_s19 }
 0x262   : > { %s973_s18 = scalar_lea.vmem %s1362_s13, 128  ;;  %s1117_s10 = smov [#allocation8]  }
 0x263   : > { %p974_p4 = scmp.ne.s32.totalorder %s1362_s13, %s973_s18  ;;  %s977_s3 = sshll.u32 %s1117_s10, 4  ;;  %s978_s3 = int_to_ptr.vmem [resolvable:$false] %s977_s3 }
 0x264   : > { %s979_s7 = scalar_lea.vmem %s978_s3, 256  ;;  %p980_p3 = scmp.lt.s32.totalorder %s1362_s13, %s978_s3 }
 0x265   : > { %p975_p8 = pnand %p974_p4, %p1245_p12  ;;  %p981_p5 = scmp.lt.s32.totalorder %s979_s7, %s973_s18 }
 0x266   : > { %s1368_s11 = scalar_lea.hbm %s1501_s5, %s1314_s23 }
 0x267   : > { %p976_p0 = pneg %p975_p8  ;;  %p982_p2 = por %p981_p5, %p980_p3 }
 0x269   : > { %p983_p6 = pnand %p982_p2, %p976_p0 }
 0x2bf   : > { %v493_v43 = vpop.permute.xlu1 %492  ;;  %v485_v44 = vpop.permute.xlu0 %484 }
 0x2c0   : > { %498 = vst.msk [vmem:[%s1357_s14] sm:$0xf] %vm481_vm2, %v493_v43  ;;  %490 = vst.msk [vmem:[%s344_s12] sm:$0xf] %vm481_vm2, %v485_v44 }
 0x2c3   : > { %v487_v45 = vpop.permute.xlu1 %486 }
 0x2c4   : > { %491 = vst.msk [vmem:[%s344_s12 + $0x4] sm:$0xf] %vm481_vm2, %v487_v45 }
 0x2c5   : > { %986 = shalt.err (!%p983_p6)
}
 0x2c6   : > { %s987_s27 = scalar_lea.hbm %s1368_s11, 128  ;;  %s991_s20 = scalar_lea.hbm %s1501_s5, 512 }
 0x2c7   : > { %p988_p7 = scmp.ne.s32.totalorder %s1368_s11, %s987_s27  ;;  %p992_p10 = scmp.lt.s32.totalorder %s1368_s11, %s1501_s5 }
 0x2c8   : > { %p993_p13 = scmp.lt.s32.totalorder %s991_s20, %s987_s27 }
 0x2c9   : > { %p989_p9 = pnand %p988_p7, %p1245_p12 }
 0x2ca   : > { %p994_p1 = por %p993_p13, %p992_p10 }
 0x2cb   : > { %p990_p11 = pneg %p989_p9 }
 0x2cd   : > { %p995_p4 = pnand %p994_p1, %p990_p11 }
 0x2cf   : > { %998 = shalt.err (!%p995_p4)
}
 0x2d0   : > { %786 = dma.vmem_to_hbm [thread:$0]  (%p1245_p12), %s1362_s13, 128, %s1368_s11, %s1372_s9, %s1113_s16, %s1113_s16, %s1116_s15   ;;  %v495_v46 = vpop.permute.xlu1 %494 }
 0x2d1   : > { %s1502_s3 = sld [smem:[#allocation23_spill]]  ;;  %499 = vst.msk [vmem:[%s1357_s14 + $0x4] sm:$0xf] %vm481_vm2, %v495_v46  ;;  %s999_s27 = scalar_lea.vmem %s1400_s19, 128 }
 0x2d2   : > { %p1000_p8 = scmp.ne.s32.totalorder %s1400_s19, %s999_s27  ;;  %s1118_s13 = smov [#allocation10]  }
 0x2d3   : > { %s1003_s11 = sshll.u32 %s1118_s13, 4  ;;  %s1004_s11 = int_to_ptr.vmem [resolvable:$false] %s1003_s11 }
 0x2d4   : > { %p1001_p0 = pnand %p1000_p8, %p1245_p12  ;;  %s1005_s28 = scalar_lea.vmem %s1004_s11, 256 }
 0x2d5   : > { %p1006_p5 = scmp.lt.s32.totalorder %s1400_s19, %s1004_s11  ;;  %p1007_p2 = scmp.lt.s32.totalorder %s1005_s28, %s999_s27 }
 0x2d6   : > { %p1002_p3 = pneg %p1001_p0 }
 0x2d7   : > { %s1406_s7 = scalar_lea.hbm %s1502_s3, %s1314_s23  ;;  %p1008_p6 = por %p1007_p2, %p1006_p5 }
 0x2d9   : > { %p1009_p7 = pnand %p1008_p6, %p1002_p3 }
 0x2db   : > { %1012 = shalt.err (!%p1009_p7)
}
 0x2dc   : > { %s1013_s23 = scalar_lea.hbm %s1406_s7, 128  ;;  %s1017_s20 = scalar_lea.hbm %s1502_s3, 512 }
 0x2dd   : > { %p1014_p9 = scmp.ne.s32.totalorder %s1406_s7, %s1013_s23  ;;  %p1018_p13 = scmp.lt.s32.totalorder %s1406_s7, %s1502_s3 }
 0x2de   : > { %p1019_p1 = scmp.lt.s32.totalorder %s1017_s20, %s1013_s23 }
 0x2df   : > { %p1015_p11 = pnand %p1014_p9, %p1245_p12 }
 0x2e0   : > { %p1020_p4 = por %p1019_p1, %p1018_p13 }
 0x2e1   : > { %p1016_p10 = pneg %p1015_p11 }
 0x2e3   : > { %p1021_p8 = pnand %p1020_p4, %p1016_p10 }
 0x2e5   : > { %1024 = shalt.err (!%p1021_p8)
}
 0x2e6   : > { %787 = dma.vmem_to_hbm [thread:$0]  (%p1245_p12), %s1400_s19, 128, %s1406_s7, %s1372_s9, %s1113_s16, %s1113_s16, %s1116_s15  }
 0x2e7 PF: > { %s1503_s18 = sld [smem:[#allocation15_spill]]  ;;  %p812_p0 = scmp.ge.s32.totalorder %s1103_s8, 2 }
 0x2e8   : > { %s1504_s10 = sld [smem:[#allocation17_spill]] }
 0x2ed   : > { %s577_s27 = sand.u32 1, %s1503_s18  }
 0x2ee   : > { %p1505_p3 = scmp.ne.s32.totalorder %s1504_s10, 0  ;;  %s578_s13 = scalar_lea.sflag [#allocation4], %s577_s27 }
 0x2f0   : > { %p800_p5 = pnand %p812_p0, %p1505_p3 }
 0x2f2   : > { %p801_p2 = pneg %p800_p5 }
 0x2f4   : > { %1066 = dma.done.wait (%p801_p2), %s578_s13, 128  }
 0x2f5   : > { %1068 = vsyncadd (%p801_p2), %s578_s13, 4294967168  ;;  %s1506_s29 = sadd.s32 4294967294, %s1103_s8  }
 0x2f6   : > { %s586_s11 = sand.u32 1, %s1506_s29  }
 0x2f7   : > { %s587_s28 = scalar_lea.sflag [#allocation9], %s586_s11 }
 0x2f8   : > { %1070 = dma.done.wait (%p801_p2), %s587_s28, 256  }
 0x2f9   : > { %1072 = vsyncadd (%p801_p2), %s587_s28, 4294967040  ;;  %s28_s8 = sadd.s32 1, %s1103_s8   ;;  %s1507_s16 = smov %s1262_s24 }
 0x2fa   : > { %p25_p12 = scmp.ge.s32.totalorder %s28_s8, 6   ;;  %s1508_s27 = sld [smem:[#allocation16_spill]] }
 0x2fb   : > { %s1509_s29 = sld [smem:[#allocation18_spill]]  ;;  %s1510_s24 = smov %s1079_s25 }
 0x2fc   : > { %s1511_s25 = smov %s1083_s26  ;;  %s1512_s26 = smov %s1507_s16 }
 0x2fd   : > { %s1513_s28 = smov %s1099_s30  ;;  %s1514_s30 = smov %s1520_s22 }
 0x2fe   :  { %27 = sbr.rel (!%p25_p12) target bundleno = 15 (0xf), region = 121 }
 0x303   :  { %601 = vsyncpa [#allocation3], 1 }
 0x304   :  { %603 = vsyncpa [#allocation3 + $0x1], 1 }
 0x305   :  { %604 = vsyncpa [#allocation6], 1 }
 0x306   :  { %605 = vsyncpa [#allocation4], 1 }
 0x307   :  { %607 = vsyncpa [#allocation4 + $0x1], 1 }
 0x308   :  { %608 = vsyncpa [#allocation9], 1 }
 0x309   :  { %610 = vsyncpa [#allocation9 + $0x1], 1 }

</bundles_post_ra>
